<compile_context>
chip_gen: v7x
topology: tpu7x:2x2x1
jax: 0.10.0
libtpu: 0.0.40
codegen_flags: <defaults>
</compile_context>

<pallas_src>
import functools

import jax
import jax.numpy as jnp
from jax.experimental import pallas as pl
from jax.experimental.pallas import tpu as pltpu


def _flash_attn_kernel(*refs, scale, gated):
    """One grid step: (batch-block b, q-tile i, k-tile j); j is the innermost reduction."""
    if gated:
        q_ref, k_ref, v_ref, pq_ref, pk_ref, o_ref, m_sc, l_sc, acc_sc = refs
    else:
        q_ref, k_ref, v_ref, o_ref, m_sc, l_sc, acc_sc = refs
        pq_ref = pk_ref = None

    kv = pl.program_id(2)

    @pl.when(kv == 0)
    def _init():
        m_sc[...] = jnp.full(m_sc.shape, -jnp.inf, dtype=m_sc.dtype)
        l_sc[...] = jnp.zeros(l_sc.shape, dtype=l_sc.dtype)
        acc_sc[...] = jnp.zeros(acc_sc.shape, dtype=acc_sc.dtype)

    q = q_ref[...]            # (Bb, Tq, D)
    k = k_ref[...]            # (Bb, Tk, D)
    v = v_ref[...]            # (Bb, Tk, Dv)

    # Fold the 1/sqrt(dim) scale (and optional pre-gates) into the matmul operands.
    # Compute the scaling in f32, then cast back to the input dtype so bf16 inputs
    # keep the fast MXU path.
    if gated:
        pq = pq_ref[...].astype(jnp.float32)          # (Bb, Tq, 1)
        pk = pk_ref[...].astype(jnp.float32)          # (Bb, Tk, 1)
        q_s = (q.astype(jnp.float32) * (pq * scale)).astype(q.dtype)
        k_s = (k.astype(jnp.float32) * pk).astype(k.dtype)
    else:
        q_s = (q.astype(jnp.float32) * scale).astype(q.dtype)
        k_s = k

    # Scores: contract on D for both operands (no explicit K transpose), f32 accumulate.
    s = jnp.einsum("bqd,bkd->bqk", q_s, k_s,
                   preferred_element_type=jnp.float32)          # (Bb, Tq, Tk)

    # Online softmax across the k-tile grid axis.
    m_prev = m_sc[...]
    m_new = jnp.maximum(m_prev, jnp.max(s, axis=-1, keepdims=True))
    alpha = jnp.exp(m_prev - m_new)
    p = jnp.exp(s - m_new)
    l_sc[...] = alpha * l_sc[...] + jnp.sum(p, axis=-1, keepdims=True)
    acc_sc[...] = alpha * acc_sc[...] + jnp.einsum(
        "bqk,bkd->bqd", p.astype(v.dtype), v, preferred_element_type=jnp.float32)
    m_sc[...] = m_new

    @pl.when(kv == pl.num_programs(2) - 1)
    def _finalize():
        inv_l = pl.reciprocal(l_sc[...], approx=True)   # EUP slot — effectively free
        o_ref[...] = (acc_sc[...] * inv_l).astype(o_ref.dtype)


def _pick_tile(extent, target):
    """Largest tile <= target that divides `extent` and is sublane-aligned (mult of 8);
    falls back to the full extent (so no masking/padding path is needed)."""
    if extent <= target:
        return extent
    for t in range(min(target, extent), 7, -1):
        if extent % t == 0 and t % 8 == 0:
            return t
    return extent


def _pick_batch_block(B, tq, tk, D, Dv, budget_bytes=8 * 1024 * 1024):
    """Pack batch elements per block while keeping the f32 working-set estimate
    (double-buffered Q/K/V/O blocks + score tile + online-softmax scratch) under budget."""
    per_b = 4 * (2 * (tq * D + tk * D + tk * Dv + tq * Dv)
                 + tq * tk + tq * Dv + 2 * tq)
    cap = max(1, budget_bytes // max(per_b, 1))
    for c in range(min(B, cap), 0, -1):
        if B % c == 0:
            return c
    return 1


def dot_product_attention(Q, K, V, p_q=None, p_k=None, *, dim=None,
                          q_tile=256, k_tile=512):
    """Pallas TPU implementation of DotProductAttention.forward."""
    B, Lq, D = Q.shape
    _, Lk, _ = K.shape
    Dv = V.shape[-1]
    if dim is None:
        dim = D
    scale = 1.0 / (float(dim) ** 0.5)
    gated = (p_q is not None) and (p_k is not None)

    tq = _pick_tile(Lq, q_tile)
    tk = _pick_tile(Lk, k_tile)
    bblk = _pick_batch_block(B, tq, tk, D, Dv)
    grid = (B // bblk, Lq // tq, Lk // tk)

    q_spec = pl.BlockSpec((bblk, tq, D), lambda b, i, j: (b, i, 0))
    k_spec = pl.BlockSpec((bblk, tk, D), lambda b, i, j: (b, j, 0))
    v_spec = pl.BlockSpec((bblk, tk, Dv), lambda b, i, j: (b, j, 0))
    o_spec = pl.BlockSpec((bblk, tq, Dv), lambda b, i, j: (b, i, 0))

    in_specs = [q_spec, k_spec, v_spec]
    args = [Q, K, V]
    if gated:
        in_specs += [pl.BlockSpec((bblk, tq, 1), lambda b, i, j: (b, i, 0)),
                     pl.BlockSpec((bblk, tk, 1), lambda b, i, j: (b, j, 0))]
        args += [p_q, p_k]

    scratch = [pltpu.VMEM((bblk, tq, 1), jnp.float32),    # running max m
               pltpu.VMEM((bblk, tq, 1), jnp.float32),    # running denom l
               pltpu.VMEM((bblk, tq, Dv), jnp.float32)]   # running weighted sum

    kernel = functools.partial(_flash_attn_kernel, scale=scale, gated=gated)

    bytes_accessed = (Q.size * Q.dtype.itemsize + K.size * K.dtype.itemsize
                      + V.size * V.dtype.itemsize + B * Lq * Dv * Q.dtype.itemsize)
    if gated:
        bytes_accessed += p_q.size * p_q.dtype.itemsize + p_k.size * p_k.dtype.itemsize
    cost = pl.CostEstimate(flops=2 * B * Lq * Lk * (D + Dv),
                           transcendentals=B * Lq * Lk,
                           bytes_accessed=int(bytes_accessed))

    return pl.pallas_call(
        kernel,
        out_shape=jax.ShapeDtypeStruct((B, Lq, Dv), Q.dtype),
        grid_spec=pltpu.PrefetchScalarGridSpec(
            num_scalar_prefetch=0,
            grid=grid,
            in_specs=in_specs,
            out_specs=o_spec,
            scratch_shapes=scratch),
        compiler_params=pltpu.CompilerParams(
            dimension_semantics=("parallel", "parallel", "arbitrary"),
            vmem_limit_bytes=32 * 1024 * 1024),
        cost_estimate=cost,
    )(*args)


def _reference(Q, K, V, p_q=None, p_k=None, dim=None):
    if dim is None:
        dim = Q.shape[-1]
    A = jnp.einsum("bqd,bkd->bqk", Q, K) / (float(dim) ** 0.5)
    if p_q is not None and p_k is not None:
        A = A * p_q * jnp.transpose(p_k, (0, 2, 1))
    W = jax.nn.softmax(A, axis=-1)
    return jnp.einsum("bqk,bkd->bqd", W, V)


if __name__ == "__main__":
    key = jax.random.PRNGKey(0)

    # --- small shapes matching the module's 3-D usage ---
    kq, kk, kv, kpq, kpk, key = jax.random.split(key, 6)
    B, Lq, Lk, D = 2, 8, 8, 32
    Q = jax.random.normal(kq, (B, Lq, D), dtype=jnp.float32)
    K = jax.random.normal(kk, (B, Lk, D), dtype=jnp.float32)
    V = jax.random.normal(kv, (B, Lk, D), dtype=jnp.float32)
    p_q = jax.nn.sigmoid(jax.random.normal(kpq, (B, Lq, 1), dtype=jnp.float32))
    p_k = jax.nn.sigmoid(jax.random.normal(kpk, (B, Lk, 1), dtype=jnp.float32))

    out_gated = jax.block_until_ready(dot_product_attention(Q, K, V, p_q, p_k, dim=D))
    ref_gated = _reference(Q, K, V, p_q, p_k, dim=D)
    out_plain = jax.block_until_ready(dot_product_attention(Q, K, V, dim=D))
    ref_plain = _reference(Q, K, V, dim=D)

    assert jnp.allclose(out_gated, ref_gated, atol=2e-3, rtol=2e-3), \
        float(jnp.max(jnp.abs(out_gated - ref_gated)))
    assert jnp.allclose(out_plain, ref_plain, atol=2e-3, rtol=2e-3), \
        float(jnp.max(jnp.abs(out_plain - ref_plain)))

    # --- moderate shapes that exercise the tiled online-softmax path (multi q/k tiles) ---
    kq2, kk2, kv2, kpq2, kpk2, key = jax.random.split(key, 6)
    B2, Lq2, Lk2, D2 = 2, 512, 1024, 64
    Q2 = jax.random.normal(kq2, (B2, Lq2, D2), dtype=jnp.float32)
    K2 = jax.random.normal(kk2, (B2, Lk2, D2), dtype=jnp.float32)
    V2 = jax.random.normal(kv2, (B2, Lk2, D2), dtype=jnp.float32)
    pq2 = jax.nn.sigmoid(jax.random.normal(kpq2, (B2, Lq2, 1), dtype=jnp.float32))
    pk2 = jax.nn.sigmoid(jax.random.normal(kpk2, (B2, Lk2, 1), dtype=jnp.float32))

    out2 = jax.block_until_ready(dot_product_attention(Q2, K2, V2, pq2, pk2, dim=D2))
    ref2 = _reference(Q2, K2, V2, pq2, pk2, dim=D2)
    assert jnp.allclose(out2, ref2, atol=2e-3, rtol=2e-3), \
        float(jnp.max(jnp.abs(out2 - ref2)))

    print("KERNEL_OK")
</pallas_src>

<mosaic_0001>
module attributes {stable_mosaic.version = 11 : i64} {
  func.func @_flash_attn_kernel(%arg0: i32, %arg1: i32, %arg2: i32, %arg3: memref<2x8x32xf32, #tpu.memory_space<vmem>>, %arg4: memref<2x8x32xf32, #tpu.memory_space<vmem>>, %arg5: memref<2x8x32xf32, #tpu.memory_space<vmem>>, %arg6: memref<2x8x1xf32, #tpu.memory_space<vmem>>, %arg7: memref<2x8x1xf32, #tpu.memory_space<vmem>>, %arg8: memref<2x8x32xf32, #tpu.memory_space<vmem>>, %arg9: memref<2x8x1xf32, #tpu.memory_space<vmem>>, %arg10: memref<2x8x1xf32, #tpu.memory_space<vmem>>, %arg11: memref<2x8x32xf32, #tpu.memory_space<vmem>>) attributes {dimension_semantics = [#tpu.dimension_semantics<parallel>, #tpu.dimension_semantics<parallel>, #tpu.dimension_semantics<arbitrary>], iteration_bounds = array<i64: 1, 1, 1>, scalar_prefetch = 0 : i64, scratch_operands = 3 : i64, tpu.core_type = #tpu.core_type<tc>, window_params = [{transform_indices = @transform_0, window_bounds = array<i64: 2, 8, 32>}, {transform_indices = @transform_1, window_bounds = array<i64: 2, 8, 32>}, {transform_indices = @transform_2, window_bounds = array<i64: 2, 8, 32>}, {transform_indices = @transform_3, window_bounds = array<i64: 2, 8, 1>}, {transform_indices = @transform_4, window_bounds = array<i64: 2, 8, 1>}, {transform_indices = @transform_5, window_bounds = array<i64: 2, 8, 32>}]} {
    %c0_i32 = arith.constant 0 : i32
    %0 = arith.cmpi eq, %arg2, %c0_i32 : i32
    %1 = arith.extui %0 : i1 to i32
    %c0_i32_0 = arith.constant 0 : i32
    %2 = arith.cmpi ne, %1, %c0_i32_0 : i32
    scf.if %2 {
      %cst_39 = arith.constant 0xFF800000 : f32
      %40 = vector.broadcast %cst_39 : f32 to vector<2x8x1xf32>
      %c0_40 = arith.constant 0 : index
      %c0_41 = arith.constant 0 : index
      %c0_42 = arith.constant 0 : index
      %41 = vector.load %arg9[%c0_40, %c0_41, %c0_42] : memref<2x8x1xf32, #tpu.memory_space<vmem>>, vector<2x8x1xf32>
      tpu.vector_store %arg9[%c0_40, %c0_41, %c0_42], %40 {strides = array<i32>} : memref<2x8x1xf32, #tpu.memory_space<vmem>>, vector<2x8x1xf32>,
      %cst_43 = arith.constant 0.000000e+00 : f32
      %42 = vector.broadcast %cst_43 : f32 to vector<2x8x1xf32>
      %c0_44 = arith.constant 0 : index
      %c0_45 = arith.constant 0 : index
      %c0_46 = arith.constant 0 : index
      %43 = vector.load %arg10[%c0_44, %c0_45, %c0_46] : memref<2x8x1xf32, #tpu.memory_space<vmem>>, vector<2x8x1xf32>
      tpu.vector_store %arg10[%c0_44, %c0_45, %c0_46], %42 {strides = array<i32>} : memref<2x8x1xf32, #tpu.memory_space<vmem>>, vector<2x8x1xf32>,
      %cst_47 = arith.constant 0.000000e+00 : f32
      %44 = vector.broadcast %cst_47 : f32 to vector<2x8x32xf32>
      %c0_48 = arith.constant 0 : index
      %c0_49 = arith.constant 0 : index
      %c0_50 = arith.constant 0 : index
      %45 = vector.load %arg11[%c0_48, %c0_49, %c0_50] : memref<2x8x32xf32, #tpu.memory_space<vmem>>, vector<2x8x32xf32>
      tpu.vector_store %arg11[%c0_48, %c0_49, %c0_50], %44 {strides = array<i32>} : memref<2x8x32xf32, #tpu.memory_space<vmem>>, vector<2x8x32xf32>,
    } else {
    }
    %c0 = arith.constant 0 : index
    %c0_1 = arith.constant 0 : index
    %c0_2 = arith.constant 0 : index
    %3 = vector.load %arg3[%c0, %c0_1, %c0_2] : memref<2x8x32xf32, #tpu.memory_space<vmem>>, vector<2x8x32xf32>
    %c0_3 = arith.constant 0 : index
    %c0_4 = arith.constant 0 : index
    %c0_5 = arith.constant 0 : index
    %4 = vector.load %arg4[%c0_3, %c0_4, %c0_5] : memref<2x8x32xf32, #tpu.memory_space<vmem>>, vector<2x8x32xf32>
    %c0_6 = arith.constant 0 : index
    %c0_7 = arith.constant 0 : index
    %c0_8 = arith.constant 0 : index
    %5 = vector.load %arg5[%c0_6, %c0_7, %c0_8] : memref<2x8x32xf32, #tpu.memory_space<vmem>>, vector<2x8x32xf32>
    %c0_9 = arith.constant 0 : index
    %c0_10 = arith.constant 0 : index
    %c0_11 = arith.constant 0 : index
    %6 = vector.load %arg6[%c0_9, %c0_10, %c0_11] : memref<2x8x1xf32, #tpu.memory_space<vmem>>, vector<2x8x1xf32>
    %c0_12 = arith.constant 0 : index
    %c0_13 = arith.constant 0 : index
    %c0_14 = arith.constant 0 : index
    %7 = vector.load %arg7[%c0_12, %c0_13, %c0_14] : memref<2x8x1xf32, #tpu.memory_space<vmem>>, vector<2x8x1xf32>
    %cst = arith.constant 0.176776692 : f32
    %8 = vector.broadcast %cst : f32 to vector<2x8x1xf32>
    %9 = arith.mulf %6, %8 : vector<2x8x1xf32>
    %10 = vector.broadcast %9 : vector<2x8x1xf32> to vector<2x8x32xf32>
    %11 = arith.mulf %3, %10 : vector<2x8x32xf32>
    %12 = vector.broadcast %7 : vector<2x8x1xf32> to vector<2x8x32xf32>
    %13 = arith.mulf %4, %12 : vector<2x8x32xf32>
    "tpu.trace_start"() <{level = 10 : i32, message = "bqd,bkd->bqk"}> : () -> ()
    %cst_15 = arith.constant dense<0.000000e+00> : vector<2x8x8xf32>
    %14 = tpu.matmul %11, %13, %cst_15 {dimension_numbers = #tpu.dot_dimension_numbers<[2], [2], [1], [1], [0, 0, 0, 1, 1, 1], [0], [0]>} : vector<2x8x32xf32>, vector<2x8x32xf32>, vector<2x8x8xf32> -> vector<2x8x8xf32>
    "tpu.trace_stop"() : () -> ()
    %c0_16 = arith.constant 0 : index
    %c0_17 = arith.constant 0 : index
    %c0_18 = arith.constant 0 : index
    %15 = vector.load %arg9[%c0_16, %c0_17, %c0_18] : memref<2x8x1xf32, #tpu.memory_space<vmem>>, vector<2x8x1xf32>
    %cst_19 = arith.constant dense<0xFF800000> : vector<2x8xf32>
    %16 = vector.multi_reduction <maximumf>, %14, %cst_19 [2] : vector<2x8x8xf32> to vector<2x8xf32>
    %17 = vector.shape_cast %16 : vector<2x8xf32> to vector<2x8x1xf32>
    %18 = arith.maximumf %15, %17 : vector<2x8x1xf32>
    %19 = arith.subf %15, %18 : vector<2x8x1xf32>
    %20 = math.exp %19 : vector<2x8x1xf32>
    %21 = vector.broadcast %18 : vector<2x8x1xf32> to vector<2x8x8xf32>
    %22 = arith.subf %14, %21 : vector<2x8x8xf32>
    %23 = math.exp %22 : vector<2x8x8xf32>
    %c0_20 = arith.constant 0 : index
    %c0_21 = arith.constant 0 : index
    %c0_22 = arith.constant 0 : index
    %24 = vector.load %arg10[%c0_20, %c0_21, %c0_22] : memref<2x8x1xf32, #tpu.memory_space<vmem>>, vector<2x8x1xf32>
    %25 = arith.mulf %20, %24 : vector<2x8x1xf32>
    %cst_23 = arith.constant dense<0.000000e+00> : vector<2x8xf32>
    %26 = vector.multi_reduction <add>, %23, %cst_23 [2] : vector<2x8x8xf32> to vector<2x8xf32>
    %27 = vector.shape_cast %26 : vector<2x8xf32> to vector<2x8x1xf32>
    %28 = arith.addf %25, %27 : vector<2x8x1xf32>
    %c0_24 = arith.constant 0 : index
    %c0_25 = arith.constant 0 : index
    %c0_26 = arith.constant 0 : index
    %29 = vector.load %arg10[%c0_24, %c0_25, %c0_26] : memref<2x8x1xf32, #tpu.memory_space<vmem>>, vector<2x8x1xf32>
    tpu.vector_store %arg10[%c0_24, %c0_25, %c0_26], %28 {strides = array<i32>} : memref<2x8x1xf32, #tpu.memory_space<vmem>>, vector<2x8x1xf32>,
    %c0_27 = arith.constant 0 : index
    %c0_28 = arith.constant 0 : index
    %c0_29 = arith.constant 0 : index
    %30 = vector.load %arg11[%c0_27, %c0_28, %c0_29] : memref<2x8x32xf32, #tpu.memory_space<vmem>>, vector<2x8x32xf32>
    %31 = vector.broadcast %20 : vector<2x8x1xf32> to vector<2x8x32xf32>
    %32 = arith.mulf %31, %30 : vector<2x8x32xf32>
    "tpu.trace_start"() <{level = 10 : i32, message = "bqk,bkd->bqd"}> : () -> ()
    %cst_30 = arith.constant dense<0.000000e+00> : vector<2x8x32xf32>
    %33 = tpu.matmul %23, %5, %cst_30 {dimension_numbers = #tpu.dot_dimension_numbers<[2], [1], [1], [2], [0, 0, 0, 1, 1, 2], [0], [0]>} : vector<2x8x8xf32>, vector<2x8x32xf32>, vector<2x8x32xf32> -> vector<2x8x32xf32>
    "tpu.trace_stop"() : () -> ()
    %34 = arith.addf %32, %33 : vector<2x8x32xf32>
    %c0_31 = arith.constant 0 : index
    %c0_32 = arith.constant 0 : index
    %c0_33 = arith.constant 0 : index
    %35 = vector.load %arg11[%c0_31, %c0_32, %c0_33] : memref<2x8x32xf32, #tpu.memory_space<vmem>>, vector<2x8x32xf32>
    tpu.vector_store %arg11[%c0_31, %c0_32, %c0_33], %34 {strides = array<i32>} : memref<2x8x32xf32, #tpu.memory_space<vmem>>, vector<2x8x32xf32>,
    %c0_34 = arith.constant 0 : index
    %c0_35 = arith.constant 0 : index
    %c0_36 = arith.constant 0 : index
    %36 = vector.load %arg9[%c0_34, %c0_35, %c0_36] : memref<2x8x1xf32, #tpu.memory_space<vmem>>, vector<2x8x1xf32>
    tpu.vector_store %arg9[%c0_34, %c0_35, %c0_36], %18 {strides = array<i32>} : memref<2x8x1xf32, #tpu.memory_space<vmem>>, vector<2x8x1xf32>,
    %c0_i32_37 = arith.constant 0 : i32
    %37 = arith.cmpi eq, %arg2, %c0_i32_37 : i32
    %38 = arith.extui %37 : i1 to i32
    %c0_i32_38 = arith.constant 0 : i32
    %39 = arith.cmpi ne, %38, %c0_i32_38 : i32
    scf.if %39 {
      %c0_39 = arith.constant 0 : index
      %c0_40 = arith.constant 0 : index
      %c0_41 = arith.constant 0 : index
      %40 = vector.load %arg10[%c0_39, %c0_40, %c0_41] : memref<2x8x1xf32, #tpu.memory_space<vmem>>, vector<2x8x1xf32>
      %41 = tpu.reciprocal %40 {approx = true} : vector<2x8x1xf32> -> vector<2x8x1xf32>
      %c0_42 = arith.constant 0 : index
      %c0_43 = arith.constant 0 : index
      %c0_44 = arith.constant 0 : index
      %42 = vector.load %arg11[%c0_42, %c0_43, %c0_44] : memref<2x8x32xf32, #tpu.memory_space<vmem>>, vector<2x8x32xf32>
      %43 = vector.broadcast %41 : vector<2x8x1xf32> to vector<2x8x32xf32>
      %44 = arith.mulf %42, %43 : vector<2x8x32xf32>
      %c0_45 = arith.constant 0 : index
      %c0_46 = arith.constant 0 : index
      %c0_47 = arith.constant 0 : index
      %45 = vector.load %arg8[%c0_45, %c0_46, %c0_47] : memref<2x8x32xf32, #tpu.memory_space<vmem>>, vector<2x8x32xf32>
      tpu.vector_store %arg8[%c0_45, %c0_46, %c0_47], %44 {strides = array<i32>} : memref<2x8x32xf32, #tpu.memory_space<vmem>>, vector<2x8x32xf32>,
    } else {
    }
    return
  }
  func.func @transform_0(%arg0: i32, %arg1: i32, %arg2: i32) -> (i32, i32, i32) {
    %c0_i32 = arith.constant 0 : i32
    %c0_i32_0 = arith.constant 0 : i32
    return %arg0, %arg1, %c0_i32 : i32, i32, i32
  }
  func.func @transform_1(%arg0: i32, %arg1: i32, %arg2: i32) -> (i32, i32, i32) {
    %c0_i32 = arith.constant 0 : i32
    %c0_i32_0 = arith.constant 0 : i32
    return %arg0, %arg2, %c0_i32 : i32, i32, i32
  }
  func.func @transform_2(%arg0: i32, %arg1: i32, %arg2: i32) -> (i32, i32, i32) {
    %c0_i32 = arith.constant 0 : i32
    %c0_i32_0 = arith.constant 0 : i32
    return %arg0, %arg2, %c0_i32 : i32, i32, i32
  }
  func.func @transform_3(%arg0: i32, %arg1: i32, %arg2: i32) -> (i32, i32, i32) {
    %c0_i32 = arith.constant 0 : i32
    %c0_i32_0 = arith.constant 0 : i32
    return %arg0, %arg1, %c0_i32 : i32, i32, i32
  }
  func.func @transform_4(%arg0: i32, %arg1: i32, %arg2: i32) -> (i32, i32, i32) {
    %c0_i32 = arith.constant 0 : i32
    %c0_i32_0 = arith.constant 0 : i32
    return %arg0, %arg2, %c0_i32 : i32, i32, i32
  }
  func.func @transform_5(%arg0: i32, %arg1: i32, %arg2: i32) -> (i32, i32, i32) {
    %c0_i32 = arith.constant 0 : i32
    %c0_i32_0 = arith.constant 0 : i32
    return %arg0, %arg1, %c0_i32 : i32, i32, i32
  }
}

</mosaic_0001>

<bundles_post_ra>
// kernel: tpu_custom_call.1
= control target key start
LH: loop header
LB: loop body
LE: loop exit
PB: predicated region body
PF: predicated region fallthrough
CT: control target
= control target key end

     0   :  { %10 = vsyncpa [#allocation6], 0  ;;  %s714_s0 = inlined_call_operand.vmem [shape: f32[2,8,32], index: 0, kind: input, shape index: {}]   ;;  %s715_s1 = inlined_call_operand.vmem [shape: f32[2,8,32], index: 1, kind: input, shape index: {}]   ;;  %s716_s2 = inlined_call_operand.hbm [shape: f32[2,8,32], index: 2, kind: input, shape index: {}]   ;;  %s717_s3 = inlined_call_operand.vmem [shape: f32[2,8,1], index: 3, kind: input, shape index: {}]   ;;  %s718_s4 = inlined_call_operand.vmem [shape: f32[2,8,1], index: 4, kind: input, shape index: {}]   ;;  %s719_s5 = inlined_call_operand.hbm [shape: f32[2,8,32], index: 5, kind: output, shape index: {}]  }
   0x1   :  { %11 = vsyncpa [#allocation7], 0  ;;  %s594_s18 = smov [#allocation5]   ;;  %s546_s22 = scalar_lea.hbm %s716_s2, 256 }
   0x2   :  { %s21_s19 = sshll.u32 %s594_s18, 4  ;;  %p547_p0 = scmp.ne.s32.totalorder %s716_s2, %s546_s22  ;;  %s22_s19 = int_to_ptr.vmem [resolvable:$true] %s21_s19 }
   0x3   :  { %p550_p1 = scmp.lt.u32.totalorder %s546_s22, %s716_s2 }
   0x5   :  { %p552_p2 = pnand %p550_p1, %p547_p0 }
   0x7   :  { %555 = shalt.err (!%p552_p2)
}
   0x8   :  { %s556_s27 = scalar_lea.vmem %s22_s19, 256  ;;  %p561_p4 = scmp.lt.s32.totalorder %s22_s19, %s22_s19 }
   0x9   :  { %p557_p3 = scmp.ne.s32.totalorder %s22_s19, %s556_s27  ;;  %p562_p5 = scmp.lt.s32.totalorder %s556_s27, %s556_s27 }
   0xb   :  { %p563_p6 = por %p562_p5, %p561_p4 }
   0xd   :  { %p564_p7 = pnand %p563_p6, %p557_p3 }
   0xf   :  { %567 = shalt.err (!%p564_p7)
}
  0x10   :  { %s595_s28 = smov 128   ;;  %s596_s29 = smov 8  }
  0x11   :  { %27 = dma.hbm_to_vmem [thread:$0]  %s716_s2, 256, %s22_s19, [#allocation6], %s595_s28, %s595_s28, %s596_s29  }
  0x12   :  { %590 = dma.done.wait [#allocation6], 256  }
  0x13   :  { %591 = vsyncadd [#allocation6], 4294967040  ;;  %v597_v0 = vmov 0   ;;  %v55_v1 = vld [vmem:[%s718_s4] sm:$0xff]  ;;  %v54_v4 = vld [vmem:[%s717_s3 + $0x8] sm:$0xff]  ;;  %v598_v6 = vmov 0.0  }
  0x14   :  { %532 = vset.pattern.permute.xlu0 %v597_v0  ;;  %533 = vset.pattern.permute.xlu1 %v597_v0  ;;  %v53_v2 = vld [vmem:[%s717_s3] sm:$0xff]  ;;  %v56_v5 = vld [vmem:[%s718_s4 + $0x8] sm:$0xff]  ;;  %vm44_vm0 = vcmask 261120   ;;  %v58_v7 = vmul.f32 0.17677669, %v54_v4  ;;  %vm599_vm1 = vmmov 0  }
  0x15   :  { %73 = vperm.xlu0 %532, %v55_v1   ;;  %v57_v3 = vmul.f32 0.17677669, %v53_v2  ;;  %504 = vmatprep.subr.mxu0 %v598_v6  ;;  %45 = vst.msk [vmem:[#allocation4] sm:$0xff] %vm44_vm0, %v598_v6  ;;  %46 = vst.msk [vmem:[#allocation4 + $0x8] sm:$0xff] %vm44_vm0, %v598_v6  ;;  %v49_v8 = vld [vmem:[%s715_s1] sm:$0xff]  ;;  %v50_v13 = vld [vmem:[%s715_s1 + $0x8] sm:$0xff] }
  0x16   :  { %509 = vmatprep.subr.mxu1 %v598_v6  ;;  %506 = vmatprep.mubr.msk.f32.mxu0 %vm599_vm1, %v598_v6  ;;  %v47_v10 = vld [vmem:[%s714_s0] sm:$0xff]  ;;  %v48_v16 = vld [vmem:[%s714_s0 + $0x8] sm:$0xff]  ;;  %vm39_vm2 = vcmask 7168   ;;  %v600_v20 = vmov -inf   ;;  %vm238_vm3 = vcmask 64512   ;;  %v51_v35 = vld [vmem:[#allocation5] sm:$0xff] }
  0x17   :  { %61 = vperm.xlu1 %533, %v57_v3   ;;  %511 = vmatprep.mubr.msk.f32.mxu1 %vm599_vm1, %v598_v6  ;;  %40 = vst.msk [vmem:[#allocation2] sm:$0xff] %vm39_vm2, %v600_v20  ;;  %41 = vst.msk [vmem:[#allocation2 + $0x8] sm:$0xff] %vm39_vm2, %v600_v20  ;;  %v52_v36 = vld [vmem:[#allocation5 + $0x8] sm:$0xff]  ;;  %s601_s0 = smov [#allocation8]  }
  0x18   :  { %42 = vst.msk [vmem:[#allocation3] sm:$0xff] %vm39_vm2, %v598_v6  ;;  %43 = vst.msk [vmem:[#allocation3 + $0x8] sm:$0xff] %vm39_vm2, %v598_v6  ;;  %s478_s1 = sshll.u32 %s601_s0, 4  ;;  %s479_s1 = int_to_ptr.vmem [resolvable:$true] %s478_s1 }
  0x19   :  { %78 = vperm.xlu0 %532, %v56_v5   ;;  %s568_s20 = scalar_lea.vmem %s479_s1, 256  ;;  %p573_p9 = scmp.lt.s32.totalorder %s479_s1, %s479_s1 }
  0x1a   :  { %p569_p8 = scmp.ne.s32.totalorder %s479_s1, %s568_s20  ;;  %p574_p10 = scmp.lt.s32.totalorder %s568_s20, %s568_s20 }
  0x1b   :  { %66 = vperm.xlu1 %533, %v58_v7  }
  0x1c   :  { %v284_v63 = vld [vmem:[#allocation4] sm:$0xff]  ;;  %v285_v2 = vld [vmem:[#allocation4 + $0x8] sm:$0xff]  ;;  %p575_p11 = por %p574_p10, %p573_p9 }
  0x1e   :  { %v236_v27 = vld [vmem:[#allocation2] sm:$0xff]  ;;  %v237_v30 = vld [vmem:[#allocation2 + $0x8] sm:$0xff]  ;;  %p576_p12 = pnand %p575_p11, %p569_p8 }
  0x1f   :  { %v269_v51 = vld [vmem:[#allocation3] sm:$0xff]  ;;  %v270_v54 = vld [vmem:[#allocation3 + $0x8] sm:$0xff] }
  0x94   :  { %v74_v9 = vpop.permute.xlu0 %73 }
  0x95   :  { %v81_v11 = vmul.f32 %v74_v9, %v49_v8 }
  0x96   :  { %v62_v12 = vpop.permute.xlu1 %61 }
  0x97   :  { %v69_v14 = vmul.f32 %v62_v12, %v47_v10  ;;  %505 = vmatpush3.xpose.msk.msra.mxu0 %vm44_vm0, %v81_v11 }
  0x98   :  { %v79_v15 = vpop.permute.xlu0 %78  ;;  %514 = vmatprep.subr.mxu0 %v598_v6 }
  0x99   :  { %v82_v17 = vmul.f32 %v79_v15, %v50_v13 }
  0x9a   :  { %v67_v18 = vpop.permute.xlu1 %66  ;;  %507 = vmatmul.mubr.msk.f32.vlgmr.msra.gmra.mrb[0].mxu0 %vm44_vm0, %v69_v14 }
  0x9b   :  { %v70_v19 = vmul.f32 %v67_v18, %v48_v16  ;;  %510 = vmatpush3.xpose.msk.msra.mxu1 %vm44_vm0, %v82_v17  ;;  %516 = vmatprep.mubr.msk.f32.mxu0 %vm599_vm1, %v598_v6 }
  0x9c   :  { %519 = vmatprep.subr.mxu1 %v598_v6  ;;  %515 = vmatpush3.msra.mxu0 %v51_v35 }
  0x9e   :  { %512 = vmatmul.mubr.msk.f32.vlgmr.msra.gmra.mrb[0].mxu1 %vm44_vm0, %v70_v19 }
  0x9f   :  { %521 = vmatprep.mubr.msk.f32.mxu1 %vm599_vm1, %v598_v6  ;;  %520 = vmatpush3.msra.mxu1 %v52_v36 }
 0x16d   :  { %v156_v21 = vpop.f32.mrb[0].mxu0 }
 0x16e   :  { %v508_v22 = vpop.f32.mrb[1].mxu0  ;;  %v239_v23 = vsel %vm238_vm3, %v156_v21, -inf }
 0x16f   :  { %240 = vmax.xlane.f32.xlu0 %v239_v23 }
 0x171   :  { %v232_v24 = vpop.f32.mrb[0].mxu1 }
 0x172   :  { %v513_v25 = vpop.f32.mrb[1].mxu1  ;;  %v242_v26 = vsel %vm238_vm3, %v232_v24, -inf }
 0x173   :  { %243 = vmax.xlane.f32.xlu1 %v242_v26 }
 0x1fc   :  { %v241_v28 = vpop.xlane.xlu0 %240 }
 0x1fd   :  { %v245_v29 = vmax.f32 %v236_v27, %v241_v28 }
 0x1ff   :  { %v247_v31 = vsub.f32 %v236_v27, %v245_v29  ;;  %448 = vst.msk [vmem:[#allocation2] sm:$0xff] %vm39_vm2, %v245_v29  ;;  %255 = vperm.xlu0 %532, %v245_v29  }
 0x200   :  { %v244_v32 = vpop.xlane.xlu1 %243 }
 0x201   :  { %v246_v33 = vmax.f32 %v237_v30, %v244_v32  ;;  %v249_v48 = vmul.f32 1.442695, %v247_v31 }
 0x203   :  { %v248_v34 = vsub.f32 %v237_v30, %v246_v33  ;;  %449 = vst.msk [vmem:[#allocation2 + $0x8] sm:$0xff] %vm39_vm2, %v246_v33  ;;  %260 = vperm.xlu1 %533, %v246_v33  }
 0x205   :  { %v251_v47 = vmul.f32 1.442695, %v248_v34 }
 0x27e   :  { %v256_v37 = vpop.permute.xlu0 %255 }
 0x27f   :  { %v263_v38 = vsub.f32 %v156_v21, %v256_v37 }
 0x281   :  { %v265_v39 = vmul.f32 1.442695, %v263_v38 }
 0x282   :  { %v261_v40 = vpop.permute.xlu1 %260 }
 0x283   :  { %534 = vpow2.f32 %v265_v39  ;;  %v264_v41 = vsub.f32 %v232_v24, %v261_v40 }
 0x285   :  { %v267_v42 = vmul.f32 1.442695, %v264_v41 }
 0x287   :  { %536 = vpow2.f32 %v267_v42 }
 0x288   :  { %538 = vpow2.f32 %v251_v47 }
 0x289   :  { %540 = vpow2.f32 %v249_v48 }
 0x28d   :  { %v535_v43 = vpop.eup %534 }
 0x28e   :  { %517 = vmatmul.mubr.msk.f32.vlgmr.msra.gmra.mrb[2].mxu0 %vm238_vm3, %v535_v43  ;;  %v273_v44 = vsel %vm238_vm3, %v535_v43, 0.0 }
 0x28f   :  { %274 = vadd.xlane.f32.xlu0 %v273_v44 }
 0x291   :  { %v537_v45 = vpop.eup %536 }
 0x292   :  { %522 = vmatmul.mubr.msk.f32.vlgmr.msra.gmra.mrb[2].mxu1 %vm238_vm3, %v537_v45  ;;  %v276_v46 = vsel %vm238_vm3, %v537_v45, 0.0  ;;  %v539_v49 = vpop.eup %538 }
 0x293   :  { %277 = vadd.xlane.f32.xlu1 %v276_v46  ;;  %v541_v50 = vpop.eup %540  ;;  %v272_v56 = vmul.f32 %v539_v49, %v270_v54 }
 0x294   :  { %v271_v52 = vmul.f32 %v541_v50, %v269_v51 }
 0x2a4   :  { %293 = vperm.xlu1 %533, %v539_v49  }
 0x2a5   :  { %288 = vperm.xlu0 %532, %v541_v50  }
 0x31c   :  { %v275_v53 = vpop.xlane.xlu0 %274 }
 0x31d   :  { %v279_v55 = vadd.f32 %v275_v53, %v271_v52 }
 0x31f   :  { %282 = vst.msk [vmem:[#allocation3] sm:$0xff] %vm39_vm2, %v279_v55 }
 0x320   :  { %v278_v57 = vpop.xlane.xlu1 %277 }
 0x321   :  { %v280_v58 = vadd.f32 %v278_v57, %v272_v56 }
 0x323   :  { %283 = vst.msk [vmem:[#allocation3 + $0x8] sm:$0xff] %vm39_vm2, %v280_v58 }
 0x324   :  { %v289_v0 = vpop.permute.xlu0 %288  ;;  %v294_v3 = vpop.permute.xlu1 %293 }
 0x325   :  { %v296_v1 = vmul.f32 %v289_v0, %v284_v63  ;;  %v297_v7 = vmul.f32 %v294_v3, %v285_v2 }
 0x326   :  { %v453_v59 = vld [vmem:[#allocation3] sm:$0xff] }
 0x327   :  { %542 = vrcp.f32 %v453_v59 }
 0x32a   :  { %v454_v60 = vld [vmem:[#allocation3 + $0x8] sm:$0xff] }
 0x32b   :  { %544 = vrcp.f32 %v454_v60 }
 0x331   :  { %v543_v61 = vpop.eup %542 }
 0x332   :  { %461 = vperm.xlu0 %532, %v543_v61  }
 0x335   :  { %v545_v62 = vpop.eup %544 }
 0x336   :  { %466 = vperm.xlu1 %533, %v545_v62  }
 0x361   :  { %v367_v4 = vpop.f32.mrb[2].mxu0 }
 0x362   :  { %v444_v5 = vadd.f32 %v367_v4, %v296_v1  ;;  %v518_v6 = vpop.f32.mrb[3].mxu0 }
 0x364   :  { %446 = vst.msk [vmem:[#allocation4] sm:$0xff] %vm44_vm0, %v444_v5 }
 0x365   :  { %v440_v8 = vpop.f32.mrb[2].mxu1 }
 0x366   :  { %v445_v9 = vadd.f32 %v440_v8, %v297_v7  ;;  %v523_v10 = vpop.f32.mrb[3].mxu1 }
 0x368   :  { %447 = vst.msk [vmem:[#allocation4 + $0x8] sm:$0xff] %vm44_vm0, %v445_v9 }
 0x36b   :  { %v457_v11 = vld [vmem:[#allocation4] sm:$0xff] }
 0x36f   :  { %v458_v14 = vld [vmem:[#allocation4 + $0x8] sm:$0xff] }
 0x3b1   :  { %v462_v12 = vpop.permute.xlu0 %461 }
 0x3b2   :  { %v469_v13 = vmul.f32 %v462_v12, %v457_v11 }
 0x3b4   :  { %471 = vst.msk [vmem:[#allocation8] sm:$0xff] %vm44_vm0, %v469_v13 }
 0x3b5   :  { %v467_v15 = vpop.permute.xlu1 %466 }
 0x3b6   :  { %v470_v16 = vmul.f32 %v467_v15, %v458_v14 }
 0x3b8   :  { %472 = vst.msk [vmem:[#allocation8 + $0x8] sm:$0xff] %vm44_vm0, %v470_v16 }
 0x3b9   :  { %579 = shalt.err (!%p576_p12)
}
 0x3ba   :  { %s580_s23 = scalar_lea.hbm %s719_s5, 256 }
 0x3bb   :  { %p581_p13 = scmp.ne.s32.totalorder %s719_s5, %s580_s23  ;;  %p584_p0 = scmp.lt.u32.totalorder %s580_s23, %s719_s5 }
 0x3bd   :  { %p586_p1 = pnand %p584_p0, %p581_p13 }
 0x3bf   :  { %589 = shalt.err (!%p586_p1)
}
 0x3c0   :  { %484 = dma.vmem_to_hbm [thread:$0]  %s479_s1, 256, %s719_s5, [#allocation7], %s595_s28, %s595_s28, %s596_s29  }
 0x3c1   :  { %592 = dma.done.wait [#allocation7], 256  }
 0x3c2   :  { %593 = vsyncadd [#allocation7], 4294967040 }
 0x3c3   :  { %488 = vsyncpa [#allocation6], 1 }
 0x3c4   :  { %489 = vsyncpa [#allocation7], 1 }

</bundles_post_ra>
